<compile_context>
chip_gen: v5e
topology: v5e:2x2
jax: 0.10.0
libtpu: 0.0.40
codegen_flags: <defaults>
</compile_context>

<pallas_src>
import functools

import jax
import jax.numpy as jnp
from jax.experimental import pallas as pl
from jax.experimental.pallas import tpu as pltpu


def _critic_kernel(xT_ref, w1_ref, b1_ref, w2_ref, b2_ref, w3_ref, b3_ref,
                   out_ref, *, tanh_dtype):
    # x^T tile: (D, TM), batch on lanes.  Cast only the matmul operand to bf16;
    # accumulation and bias adds stay f32.
    xT = xT_ref[...].astype(jnp.bfloat16)

    # h1 = tanh(W1 @ x^T + b1)   -> (fc1, TM); plain matmul, no relayout.
    a1 = jnp.dot(w1_ref[...], xT,
                 preferred_element_type=jnp.float32) + b1_ref[...]
    h1 = jnp.tanh(a1.astype(tanh_dtype))

    # h2 = tanh(W2 @ h1 + b2)    -> (fc2, TM)
    a2 = jnp.dot(w2_ref[...], h1.astype(jnp.bfloat16),
                 preferred_element_type=jnp.float32) + b2_ref[...]
    h2 = jnp.tanh(a2.astype(tanh_dtype))

    # Final N=1 linear as a VPU multiply + sublane reduce (avoids a 1-lane MXU
    # matmul); result is a lane-dense (1, TM) row.
    v = jnp.sum(h2.astype(jnp.float32) * w3_ref[...],
                axis=0, keepdims=True) + b3_ref[...]
    out_ref[...] = v.astype(out_ref.dtype)


def _round_up(x, m):
    return ((x + m - 1) // m) * m


def _has_bf16_eup():
    """bf16 tanh on the EUP is only a win on v6e / v7x."""
    try:
        kind = jax.devices()[0].device_kind.lower()
    except Exception:
        return False
    return not any(old in kind for old in ("v2", "v3", "v4", "v5"))


def _tile_batch(B, tm_max, min_tiles):
    """Pick (TM, n_tiles) so tiles divide B nearly evenly and TM is a legal
    lane-dim block size (multiple of 128, or equal to the full padded batch)."""
    n = max(min_tiles, pl.cdiv(B, tm_max))
    if n == 1:
        return _round_up(B, 8), 1
    return _round_up(pl.cdiv(B, n), 128), n


def continuous_critic_forward(state, params, *, tm_max=4096, tanh_dtype=None):
    """state: (B, input_dims) float32 -> (B, 1) float32."""
    w1, b1, w2, b2, w3, b3 = params
    B, D = state.shape

    if tanh_dtype is None:
        tanh_dtype = jnp.bfloat16 if _has_bf16_eup() else jnp.float32

    # Use >= 2 tiles for reasonably sized batches so the "parallel" grid axis
    # can shard across v7x's two TensorCores.
    min_tiles = 2 if B >= 512 else 1
    TM, n_tiles = _tile_batch(B, tm_max, min_tiles)
    B_pad = n_tiles * TM

    # Feed state transposed (D, B_pad): lane-dense x tiles, no in-kernel
    # relayout.  (Under jit the transpose/pad fuse into the producer.)
    xT = state.T
    if B_pad != B:
        xT = jnp.pad(xT, ((0, 0), (0, B_pad - B)))

    # Matmul operands in bf16 (halves weight DMA); head weight / biases f32.
    w1b = w1.astype(jnp.bfloat16)
    w2b = w2.astype(jnp.bfloat16)

    # Constant block index -> weights/biases fetched once, stay VMEM-resident.
    resident = lambda shape: pl.BlockSpec(shape, lambda i: (0, 0))

    out = pl.pallas_call(
        functools.partial(_critic_kernel, tanh_dtype=tanh_dtype),
        out_shape=jax.ShapeDtypeStruct((1, B_pad), jnp.float32),
        grid=(n_tiles,),
        in_specs=[
            pl.BlockSpec((D, TM), lambda i: (0, i)),   # state^T tiles stream
            resident(w1b.shape), resident(b1.shape),
            resident(w2b.shape), resident(b2.shape),
            resident(w3.shape), resident(b3.shape),
        ],
        out_specs=pl.BlockSpec((1, TM), lambda i: (0, i)),  # lane-dense output
        compiler_params=pltpu.CompilerParams(
            dimension_semantics=("parallel",),   # shard batch across v7x's TCs
            vmem_limit_bytes=32 << 20,           # headroom for TM=4096 tiles
        ),
    )(xT, w1b, b1, w2b, b2, w3, b3)

    # (1, B_pad) lane-dense slab -> (B, 1) to match the PyTorch module.
    return out[0, :B][:, None]


def init_params(key, input_dims, fc1=128, fc2=128):
    """PyTorch nn.Linear-style init: U(-1/sqrt(fan_in), 1/sqrt(fan_in)).
    Weights kept in PyTorch layout (out_features, in_features), all f32.
    Biases are stored as (out, 1) columns so they broadcast over the lane
    (batch) axis; the head weight is a (fc2, 1) column for the VPU reduce."""
    ks = jax.random.split(key, 6)

    def linear(kw, kb, fan_in, fan_out):
        bound = 1.0 / jnp.sqrt(jnp.float32(fan_in))
        w = jax.random.uniform(kw, (fan_out, fan_in), jnp.float32, -bound, bound)
        b = jax.random.uniform(kb, (fan_out, 1), jnp.float32, -bound, bound)
        return w, b

    w1, b1 = linear(ks[0], ks[1], input_dims, fc1)
    w2, b2 = linear(ks[2], ks[3], fc1, fc2)
    w3, b3 = linear(ks[4], ks[5], fc2, 1)           # w3: (1, fc2), b3: (1, 1)
    return (w1, b1, w2, b2, w3.T, b3)               # w3 as a (fc2, 1) column


def reference_forward_f32(state, params):
    """Full-precision reference (matches the PyTorch module's math)."""
    w1, b1, w2, b2, w3, b3 = params
    h1 = jnp.tanh(state @ w1.T + b1[:, 0])
    h2 = jnp.tanh(h1 @ w2.T + b2[:, 0])
    return h2 @ w3 + b3[0]                           # (B, 1)


def reference_forward_matched(state, params, tanh_dtype):
    """Reference that mirrors the kernel's precision policy exactly."""
    w1, b1, w2, b2, w3, b3 = params
    xT = state.T.astype(jnp.bfloat16)
    a1 = jnp.dot(w1.astype(jnp.bfloat16), xT,
                 preferred_element_type=jnp.float32) + b1
    h1 = jnp.tanh(a1.astype(tanh_dtype))
    a2 = jnp.dot(w2.astype(jnp.bfloat16), h1.astype(jnp.bfloat16),
                 preferred_element_type=jnp.float32) + b2
    h2 = jnp.tanh(a2.astype(tanh_dtype))
    v = jnp.sum(h2.astype(jnp.float32) * w3, axis=0, keepdims=True) + b3
    return v.T                                       # (B, 1)


if __name__ == "__main__":
    key = jax.random.PRNGKey(0)
    k_state, k_params = jax.random.split(key)

    batch, input_dims = 8, 32
    state = jax.random.normal(k_state, (batch, input_dims), jnp.float32)
    params = init_params(k_params, input_dims, fc1=128, fc2=128)

    forward = jax.jit(continuous_critic_forward)
    v = jax.block_until_ready(forward(state, params))

    tanh_dtype = jnp.bfloat16 if _has_bf16_eup() else jnp.float32
    v_matched = reference_forward_matched(state, params, tanh_dtype)
    v_f32 = reference_forward_f32(state, params)

    assert v.shape == (batch, 1), v.shape
    # Exact-policy reference (same bf16/f32 mix as the kernel): tight tolerance.
    assert jnp.allclose(v, v_matched, atol=2e-3, rtol=2e-3), (v, v_matched)
    # True f32 PyTorch math: loose tolerance (bf16 weights/activations).
    assert jnp.allclose(v, v_f32, atol=5e-2, rtol=5e-2), (v, v_f32)

    print("KERNEL_OK")
</pallas_src>

<mosaic_0001>
module attributes {stable_mosaic.version = 11 : i64} {
  func.func @_critic_kernel(%arg0: i32, %arg1: memref<32x8xf32, #tpu.memory_space<vmem>>, %arg2: memref<128x32xbf16, #tpu.memory_space<vmem>>, %arg3: memref<128x1xf32, #tpu.memory_space<vmem>>, %arg4: memref<128x128xbf16, #tpu.memory_space<vmem>>, %arg5: memref<128x1xf32, #tpu.memory_space<vmem>>, %arg6: memref<128x1xf32, #tpu.memory_space<vmem>>, %arg7: memref<1x1xf32, #tpu.memory_space<vmem>>, %arg8: memref<1x8xf32, #tpu.memory_space<vmem>>) attributes {dimension_semantics = [#tpu.dimension_semantics<parallel>], iteration_bounds = array<i64: 1>, scalar_prefetch = 0 : i64, scratch_operands = 0 : i64, tpu.core_type = #tpu.core_type<tc>, window_params = [{transform_indices = @transform_0, window_bounds = array<i64: 32, 8>}, {pipeline_mode = #tpu.pipeline_mode<synchronous>, transform_indices = @transform_1, window_bounds = array<i64: 128, 32>}, {pipeline_mode = #tpu.pipeline_mode<synchronous>, transform_indices = @transform_2, window_bounds = array<i64: 128, 1>}, {pipeline_mode = #tpu.pipeline_mode<synchronous>, transform_indices = @transform_3, window_bounds = array<i64: 128, 128>}, {pipeline_mode = #tpu.pipeline_mode<synchronous>, transform_indices = @transform_4, window_bounds = array<i64: 128, 1>}, {pipeline_mode = #tpu.pipeline_mode<synchronous>, transform_indices = @transform_5, window_bounds = array<i64: 128, 1>}, {pipeline_mode = #tpu.pipeline_mode<synchronous>, transform_indices = @transform_6, window_bounds = array<i64: 1, 1>}, {transform_indices = @transform_7, window_bounds = array<i64: 1, 8>}]} {
    %c0 = arith.constant 0 : index
    %c0_0 = arith.constant 0 : index
    %0 = vector.load %arg1[%c0, %c0_0] : memref<32x8xf32, #tpu.memory_space<vmem>>, vector<32x8xf32>
    %1 = arith.truncf %0 : vector<32x8xf32> to vector<32x8xbf16>
    %c0_1 = arith.constant 0 : index
    %c0_2 = arith.constant 0 : index
    %2 = vector.load %arg2[%c0_1, %c0_2] : memref<128x32xbf16, #tpu.memory_space<vmem>>, vector<128x32xbf16>
    %cst = arith.constant dense<0.000000e+00> : vector<128x8xf32>
    %3 = tpu.matmul %2, %1, %cst {dimension_numbers = #tpu.dot_dimension_numbers<[1], [0], [0], [1], [0, 0, 1, 1], [], []>} : vector<128x32xbf16>, vector<32x8xbf16>, vector<128x8xf32> -> vector<128x8xf32>
    %c0_3 = arith.constant 0 : index
    %c0_4 = arith.constant 0 : index
    %4 = vector.load %arg3[%c0_3, %c0_4] : memref<128x1xf32, #tpu.memory_space<vmem>>, vector<128x1xf32>
    %5 = vector.broadcast %4 : vector<128x1xf32> to vector<128x8xf32>
    %6 = arith.addf %3, %5 : vector<128x8xf32>
    %7 = arith.truncf %6 : vector<128x8xf32> to vector<128x8xbf16>
    %8 = math.tanh %7 : vector<128x8xbf16>
    %c0_5 = arith.constant 0 : index
    %c0_6 = arith.constant 0 : index
    %9 = vector.load %arg4[%c0_5, %c0_6] : memref<128x128xbf16, #tpu.memory_space<vmem>>, vector<128x128xbf16>
    %cst_7 = arith.constant dense<0.000000e+00> : vector<128x8xf32>
    %10 = tpu.matmul %9, %8, %cst_7 {dimension_numbers = #tpu.dot_dimension_numbers<[1], [0], [0], [1], [0, 0, 1, 1], [], []>} : vector<128x128xbf16>, vector<128x8xbf16>, vector<128x8xf32> -> vector<128x8xf32>
    %c0_8 = arith.constant 0 : index
    %c0_9 = arith.constant 0 : index
    %11 = vector.load %arg5[%c0_8, %c0_9] : memref<128x1xf32, #tpu.memory_space<vmem>>, vector<128x1xf32>
    %12 = vector.broadcast %11 : vector<128x1xf32> to vector<128x8xf32>
    %13 = arith.addf %10, %12 : vector<128x8xf32>
    %14 = arith.truncf %13 : vector<128x8xf32> to vector<128x8xbf16>
    %15 = math.tanh %14 : vector<128x8xbf16>
    %16 = arith.extf %15 : vector<128x8xbf16> to vector<128x8xf32>
    %c0_10 = arith.constant 0 : index
    %c0_11 = arith.constant 0 : index
    %17 = vector.load %arg6[%c0_10, %c0_11] : memref<128x1xf32, #tpu.memory_space<vmem>>, vector<128x1xf32>
    %18 = vector.broadcast %17 : vector<128x1xf32> to vector<128x8xf32>
    %19 = arith.mulf %16, %18 : vector<128x8xf32>
    %cst_12 = arith.constant dense<0.000000e+00> : vector<8xf32>
    %20 = vector.multi_reduction <add>, %19, %cst_12 [0] : vector<128x8xf32> to vector<8xf32>
    %21 = vector.shape_cast %20 : vector<8xf32> to vector<1x8xf32>
    %c0_13 = arith.constant 0 : index
    %c0_14 = arith.constant 0 : index
    %22 = vector.load %arg7[%c0_13, %c0_14] : memref<1x1xf32, #tpu.memory_space<vmem>>, vector<1x1xf32>
    %23 = vector.broadcast %22 : vector<1x1xf32> to vector<1x8xf32>
    %24 = arith.addf %21, %23 : vector<1x8xf32>
    %c0_15 = arith.constant 0 : index
    %c0_16 = arith.constant 0 : index
    %25 = vector.load %arg8[%c0_15, %c0_16] : memref<1x8xf32, #tpu.memory_space<vmem>>, vector<1x8xf32>
    tpu.vector_store %arg8[%c0_15, %c0_16], %24 {strides = array<i32>} : memref<1x8xf32, #tpu.memory_space<vmem>>, vector<1x8xf32>,
    return
  }
  func.func @transform_0(%arg0: i32) -> (i32, i32) {
    %c0_i32 = arith.constant 0 : i32
    %c0_i32_0 = arith.constant 0 : i32
    return %c0_i32, %arg0 : i32, i32
  }
  func.func @transform_1(%arg0: i32) -> (i32, i32) {
    %c0_i32 = arith.constant 0 : i32
    %c0_i32_0 = arith.constant 0 : i32
    %c0_i32_1 = arith.constant 0 : i32
    return %c0_i32, %c0_i32_0 : i32, i32
  }
  func.func @transform_2(%arg0: i32) -> (i32, i32) {
    %c0_i32 = arith.constant 0 : i32
    %c0_i32_0 = arith.constant 0 : i32
    %c0_i32_1 = arith.constant 0 : i32
    return %c0_i32, %c0_i32_0 : i32, i32
  }
  func.func @transform_3(%arg0: i32) -> (i32, i32) {
    %c0_i32 = arith.constant 0 : i32
    %c0_i32_0 = arith.constant 0 : i32
    %c0_i32_1 = arith.constant 0 : i32
    return %c0_i32, %c0_i32_0 : i32, i32
  }
  func.func @transform_4(%arg0: i32) -> (i32, i32) {
    %c0_i32 = arith.constant 0 : i32
    %c0_i32_0 = arith.constant 0 : i32
    %c0_i32_1 = arith.constant 0 : i32
    return %c0_i32, %c0_i32_0 : i32, i32
  }
  func.func @transform_5(%arg0: i32) -> (i32, i32) {
    %c0_i32 = arith.constant 0 : i32
    %c0_i32_0 = arith.constant 0 : i32
    %c0_i32_1 = arith.constant 0 : i32
    return %c0_i32, %c0_i32_0 : i32, i32
  }
  func.func @transform_6(%arg0: i32) -> (i32, i32) {
    %c0_i32 = arith.constant 0 : i32
    %c0_i32_0 = arith.constant 0 : i32
    %c0_i32_1 = arith.constant 0 : i32
    return %c0_i32, %c0_i32_0 : i32, i32
  }
  func.func @transform_7(%arg0: i32) -> (i32, i32) {
    %c0_i32 = arith.constant 0 : i32
    %c0_i32_0 = arith.constant 0 : i32
    return %c0_i32, %arg0 : i32, i32
  }
}

</mosaic_0001>

<bundles_post_ra>
// kernel: continuous_critic_forward.1
= control target key start
LH: loop header
LB: loop body
LE: loop exit
PB: predicated region body
PF: predicated region fallthrough
CT: control target
= control target key end

     0   :  { %s1275_s0 = inlined_call_operand.vmem [shape: f32[32,8], index: 0, kind: input, shape index: {}]   ;;  %s1276_s1 = inlined_call_operand.vmem [shape: bf16[128,32], index: 1, kind: input, shape index: {}]   ;;  %s1277_s2 = inlined_call_operand.vmem [shape: f32[128,1], index: 2, kind: input, shape index: {}]   ;;  %s1278_s3 = inlined_call_operand.vmem [shape: bf16[128,128], index: 3, kind: input, shape index: {}]   ;;  %s1279_s4 = inlined_call_operand.vmem [shape: f32[128,1], index: 4, kind: input, shape index: {}]   ;;  %s1280_s5 = inlined_call_operand.vmem [shape: f32[128,1], index: 5, kind: input, shape index: {}]   ;;  %s1281_s6 = inlined_call_operand.<no memory space> [shape: f32[1,1], index: 6, kind: input, shape index: {}]   ;;  %s1282_s7 = inlined_call_operand.hbm [shape: f32[1,8], index: 7, kind: output, shape index: {}]  }
   0x1   :  { %v12_v0 = vstv %s1281_s6 }
   0x2   :  { %13 = vst [vmem:[#allocation2] sm:$0x1] %v12_v0 }
   0x3   :  { %v66_v1 = vld [vmem:[%s1277_s2 + $0x70] sm:$0xff]  ;;  %v64_v2 = vld [vmem:[%s1277_s2 + $0x60] sm:$0xff]  ;;  %v968_v4 = vmov 0   ;;  %v33_v6 = vld [vmem:[%s1275_s0 + $0x18] sm:$0xff] }
   0x4   :  { %v62_v3 = vld [vmem:[%s1277_s2 + $0x50] sm:$0xff]  ;;  %877 = vset.pattern.permute.xlu2 %v968_v4  ;;  %876 = vset.pattern.permute.xlu1 %v968_v4  ;;  %v30_v7 = vld [vmem:[%s1275_s0] sm:$0xff]  ;;  %v31_v9 = vld [vmem:[%s1275_s0 + $0x8] sm:$0xff] }
   0x5   :  { %v32_v5 = vld [vmem:[%s1275_s0 + $0x10] sm:$0xff]  ;;  %875 = vset.pattern.permute.xlu0 %v968_v4  ;;  %130 = vperm.xlu1 %876, %v64_v2   ;;  %v34_v10 = vpack.c.bf16 %v31_v9, %v30_v7  ;;  %v67_v11 = vld [vmem:[%s1277_s2 + $0x78] sm:$0xff]  ;;  %v65_v12 = vld [vmem:[%s1277_s2 + $0x68] sm:$0xff] }
   0x6   :  { %v35_v8 = vpack.c.bf16 %v33_v6, %v32_v5  ;;  %140 = vperm.xlu0 %875, %v66_v1   ;;  %120 = vperm.xlu2 %877, %v62_v3   ;;  %v63_v13 = vld [vmem:[%s1277_s2 + $0x58] sm:$0xff]  ;;  %v847_v14 = vld [vmem:[%s1276_s1] sm:$0xff]  ;;  %v852_v15 = vld [vmem:[%s1276_s1 + $0x28] sm:$0xff] }
   0x8   :  { %219 = vmatpush.bf16.msra.mxu0 %v35_v8  ;;  %863 = vmatpush.bf16.msra.mxu3 %v35_v8 }
   0xc   :  { %220 = vmatpush.bf16.msra.mxu0 %v34_v10  ;;  %864 = vmatpush.bf16.msra.mxu3 %v34_v10 }
   0xd   :  { %14 = vsyncpa [#allocation4], 0  ;;  %vm188_vm0 = vcmask 261120   ;;  %135 = vperm.xlu1 %876, %v65_v12   ;;  %v61_v16 = vld [vmem:[%s1277_s2 + $0x48] sm:$0xff]  ;;  %v60_v17 = vld [vmem:[%s1277_s2 + $0x40] sm:$0xff]  ;;  %vm711_vm1 = vcmask 64512  }
   0xe   :  { %145 = vperm.xlu0 %875, %v67_v11   ;;  %125 = vperm.xlu2 %877, %v63_v13   ;;  %v58_v18 = vld [vmem:[%s1277_s2 + $0x30] sm:$0xff]  ;;  %v59_v19 = vld [vmem:[%s1277_s2 + $0x38] sm:$0xff]  ;;  %v56_v20 = vld [vmem:[%s1277_s2 + $0x20] sm:$0xff]  ;;  %vm757_vm2 = vcmask 57344  }
   0xf   :  { %807 = vmatmul.msk.bf16.vlgmr.msra.gmra.mxu0 %vm188_vm0, %v847_v14  ;;  %812 = vmatmul.msk.bf16.vlgmr.msra.gmra.mxu3 %vm188_vm0, %v852_v15  ;;  %v57_v21 = vld [vmem:[%s1277_s2 + $0x28] sm:$0xff]  ;;  %v853_v23 = vld [vmem:[%s1276_s1 + $0x30] sm:$0xff]  ;;  %v55_v24 = vld [vmem:[%s1277_s2 + $0x18] sm:$0xff] }
  0x10   :  { %v848_v22 = vld [vmem:[%s1276_s1 + $0x8] sm:$0xff]  ;;  %v54_v25 = vld [vmem:[%s1277_s2 + $0x10] sm:$0xff]  ;;  %v52_v26 = vld [vmem:[%s1277_s2] sm:$0xff] }
  0x11   :  { %v326_v27 = vld [vmem:[%s1279_s4] sm:$0xff]  ;;  %v53_v28 = vld [vmem:[%s1277_s2 + $0x8] sm:$0xff]  ;;  %v849_v30 = vld [vmem:[%s1276_s1 + $0x10] sm:$0xff]  ;;  %s766_s2 = sshll.u32 %s1282_s7, 4  ;;  %s767_s2 = int_to_ptr.hbm [resolvable:$true] %s766_s2 }
  0x12   :  { %v327_v29 = vld [vmem:[%s1279_s4 + $0x8] sm:$0xff]  ;;  %v854_v31 = vld [vmem:[%s1276_s1 + $0x38] sm:$0xff]  ;;  %v328_v33 = vld [vmem:[%s1279_s4 + $0x10] sm:$0xff] }
  0x13   :  { %v329_v32 = vld [vmem:[%s1279_s4 + $0x18] sm:$0xff]  ;;  %v330_v34 = vld [vmem:[%s1279_s4 + $0x20] sm:$0xff]  ;;  %v332_v35 = vld [vmem:[%s1279_s4 + $0x30] sm:$0xff] }
  0x14   :  { %v331_v36 = vld [vmem:[%s1279_s4 + $0x28] sm:$0xff]  ;;  %v333_v37 = vld [vmem:[%s1279_s4 + $0x38] sm:$0xff]  ;;  %v334_v40 = vld [vmem:[%s1279_s4 + $0x40] sm:$0xff] }
  0x15   :  { %115 = vperm.xlu1 %876, %v61_v16   ;;  %v850_v38 = vld [vmem:[%s1276_s1 + $0x18] sm:$0xff]  ;;  %v335_v39 = vld [vmem:[%s1279_s4 + $0x48] sm:$0xff]  ;;  %v336_v41 = vld [vmem:[%s1279_s4 + $0x50] sm:$0xff] }
  0x16   :  { %110 = vperm.xlu0 %875, %v60_v17   ;;  %100 = vperm.xlu2 %877, %v58_v18   ;;  %v338_v42 = vld [vmem:[%s1279_s4 + $0x60] sm:$0xff]  ;;  %v337_v43 = vld [vmem:[%s1279_s4 + $0x58] sm:$0xff]  ;;  %v339_v44 = vld [vmem:[%s1279_s4 + $0x68] sm:$0xff] }
  0x17   :  { %v851_v45 = vld [vmem:[%s1276_s1 + $0x20] sm:$0xff]  ;;  %v341_v46 = vld [vmem:[%s1279_s4 + $0x78] sm:$0xff]  ;;  %v340_v47 = vld [vmem:[%s1279_s4 + $0x70] sm:$0xff] }
  0x18   :  { %v599_v48 = vld [vmem:[%s1280_s5] sm:$0xff]  ;;  %v601_v49 = vld [vmem:[%s1280_s5 + $0x10] sm:$0xff]  ;;  %v600_v50 = vld [vmem:[%s1280_s5 + $0x8] sm:$0xff] }
  0x19   :  { %v602_v51 = vld [vmem:[%s1280_s5 + $0x18] sm:$0xff]  ;;  %v604_v52 = vld [vmem:[%s1280_s5 + $0x28] sm:$0xff]  ;;  %v603_v53 = vld [vmem:[%s1280_s5 + $0x20] sm:$0xff] }
  0x1a   :  { %v605_v54 = vld [vmem:[%s1280_s5 + $0x30] sm:$0xff]  ;;  %v607_v55 = vld [vmem:[%s1280_s5 + $0x40] sm:$0xff]  ;;  %v606_v56 = vld [vmem:[%s1280_s5 + $0x38] sm:$0xff] }
  0x1b   :  { %v608_v57 = vld [vmem:[%s1280_s5 + $0x48] sm:$0xff]  ;;  %v610_v58 = vld [vmem:[%s1280_s5 + $0x58] sm:$0xff]  ;;  %v609_v59 = vld [vmem:[%s1280_s5 + $0x50] sm:$0xff] }
  0x1c   :  { %v611_v60 = vld [vmem:[%s1280_s5 + $0x60] sm:$0xff]  ;;  %v613_v63 = vld [vmem:[%s1280_s5 + $0x70] sm:$0xff]  ;;  %v612_v0 = vld [vmem:[%s1280_s5 + $0x68] sm:$0xff] }
  0x1d   :  { %90 = vperm.xlu1 %876, %v56_v20   ;;  %v614_v1 = vld [vmem:[%s1280_s5 + $0x78] sm:$0xff]  ;;  %v749_v4 = vld [vmem:[#allocation2] sm:$0x1] }
  0x1e   :  { %105 = vperm.xlu0 %875, %v59_v19   ;;  %95 = vperm.xlu2 %877, %v57_v21  }
  0x1f   :  { %808 = vmatmul.msk.bf16.gmra.mxu0 %vm188_vm0, %v848_v22  ;;  %813 = vmatmul.msk.bf16.gmra.mxu3 %vm188_vm0, %v853_v23 }
  0x25   :  { %85 = vperm.xlu1 %876, %v55_v24  }
  0x26   :  { %80 = vperm.xlu0 %875, %v54_v25   ;;  %70 = vperm.xlu2 %877, %v52_v26  }
  0x2d   :  { %344 = vperm.xlu1 %876, %v326_v27  }
  0x2e   :  { %75 = vperm.xlu0 %875, %v53_v28   ;;  %349 = vperm.xlu2 %877, %v327_v29  }
  0x2f   :  { %809 = vmatmul.msk.bf16.gmra.mxu0 %vm188_vm0, %v849_v30  ;;  %814 = vmatmul.msk.bf16.gmra.mxu3 %vm188_vm0, %v854_v31 }
  0x35   :  { %359 = vperm.xlu1 %876, %v329_v32  }
  0x36   :  { %354 = vperm.xlu0 %875, %v328_v33   ;;  %364 = vperm.xlu2 %877, %v330_v34  }
  0x3d   :  { %374 = vperm.xlu1 %876, %v332_v35  }
  0x3e   :  { %369 = vperm.xlu0 %875, %v331_v36   ;;  %379 = vperm.xlu2 %877, %v333_v37  }
  0x3f   :  { %810 = vmatmul.msk.bf16.gmra.mxu0 %vm188_vm0, %v850_v38 }
  0x45   :  { %389 = vperm.xlu1 %876, %v335_v39  }
  0x46   :  { %384 = vperm.xlu0 %875, %v334_v40   ;;  %394 = vperm.xlu2 %877, %v336_v41  }
  0x4d   :  { %404 = vperm.xlu1 %876, %v338_v42  }
  0x4e   :  { %399 = vperm.xlu0 %875, %v337_v43   ;;  %409 = vperm.xlu2 %877, %v339_v44  }
  0x4f   :  { %811 = vmatmul.msk.bf16.gmra.mxu0 %vm188_vm0, %v851_v45 }
  0x55   :  { %419 = vperm.xlu1 %876, %v341_v46  }
  0x56   :  { %414 = vperm.xlu0 %875, %v340_v47   ;;  %617 = vperm.xlu2 %877, %v599_v48  }
  0x5d   :  { %627 = vperm.xlu1 %876, %v601_v49  }
  0x5e   :  { %622 = vperm.xlu0 %875, %v600_v50   ;;  %632 = vperm.xlu2 %877, %v602_v51  }
  0x60   :  { %v121_v61 = vpop.permute.xlu2 %120 }
  0x65   :  { %642 = vperm.xlu1 %876, %v604_v52  }
  0x66   :  { %637 = vperm.xlu0 %875, %v603_v53   ;;  %647 = vperm.xlu2 %877, %v605_v54  }
  0x68   :  { %v126_v3 = vpop.permute.xlu2 %125 }
  0x6d   :  { %657 = vperm.xlu1 %876, %v607_v55  }
  0x6e   :  { %652 = vperm.xlu0 %875, %v606_v56   ;;  %662 = vperm.xlu2 %877, %v608_v57  }
  0x70   :  { %v1203_v6 = vpop.permute.xlu2 %100 }
  0x75   :  { %672 = vperm.xlu1 %876, %v610_v58  }
  0x76   :  { %667 = vperm.xlu0 %875, %v609_v59   ;;  %677 = vperm.xlu2 %877, %v611_v60  }
  0x77   :  { %v131_v23 = vpop.permute.xlu1 %130 }
  0x78   :  { %v141_v62 = vpop.permute.xlu0 %140  ;;  %v96_v11 = vpop.permute.xlu2 %95 }
  0x7d   :  { %687 = vperm.xlu1 %876, %v613_v63  }
  0x7e   :  { %682 = vperm.xlu0 %875, %v612_v0   ;;  %692 = vperm.xlu2 %877, %v614_v1  }
  0x7f   :  { %v136_v27 = vpop.permute.xlu1 %135 }
  0x80   :  { %v146_v2 = vpop.permute.xlu0 %145  ;;  %v71_v15 = vpop.permute.xlu2 %70 }
  0x86   :  { %752 = vperm.xlu0 %875, %v749_v4  }
  0x87   :  { %v116_v43 = vpop.permute.xlu1 %115 }
  0x88   :  { %v1201_v5 = vpop.permute.xlu0 %110 }
  0x8c   :  { %v222_v7 = vpop.f32.mrf.mxu0 }
  0x8d   :  { %v223_v17 = vadd.f32 %v222_v7, %v71_v15 }
  0x8f   :  { %v91_v54 = vpop.permute.xlu1 %90 }
  0x90   :  { %v106_v8 = vpop.permute.xlu0 %105 }
  0x92   :  { %v247_v9 = vpop.f32.mrf.mxu3 }
  0x93   :  { %v248_v32 = vadd.f32 %v247_v9, %v121_v61 }
  0x94   :  { %v224_v10 = vpop.f32.mrf.mxu0 }
  0x97   :  { %v86_v1 = vpop.permute.xlu1 %85 }
  0x98   :  { %v1205_v12 = vpop.permute.xlu0 %80 }
  0x9a   :  { %v249_v13 = vpop.f32.mrf.mxu3 }
  0x9b   :  { %v250_v33 = vadd.f32 %v249_v13, %v126_v3 }
  0x9c   :  { %v1207_v14 = vpop.f32.mrf.mxu0 }
  0x9d   :  { %v267_v38 = vpack.c.bf16 %v250_v33, %v248_v32 }
  0x9f   :  { %v280_v44 = vunpack.c.l.bf16 %v267_v38  ;;  %v281_v45 = vunpack.c.h.bf16 %v267_v38  ;;  %v861_v38 = vld [vmem:[%s1278_s3 + $0x30] sm:$0xff] }
  0xa0   :  { %v76_v16 = vpop.permute.xlu0 %75 }
  0xa1   :  { %v225_v18 = vadd.f32 %v224_v10, %v76_v16 }
  0xa2   :  { %v252_v19 = vpop.f32.mrf.mxu3 }
  0xa3   :  { %v1209_v20 = vpack.c.bf16 %v225_v18, %v223_v17  ;;  %v253_v28 = vadd.f32 %v252_v19, %v131_v23 }
  0xa4   :  { %v229_v21 = vpop.f32.mrf.mxu0 }
  0xa5   :  { %v230_v4 = vadd.f32 %v229_v21, %v86_v1 }
  0xaa   :  { %v254_v22 = vpop.f32.mrf.mxu3 }
  0xab   :  { %v255_v29 = vadd.f32 %v254_v22, %v136_v27 }
  0xac   :  { %v232_v24 = vpop.f32.mrf.mxu0 }
  0xad   :  { %v268_v34 = vpack.c.bf16 %v255_v29, %v253_v28 }
  0xaf   :  { %v282_v39 = vunpack.c.l.bf16 %v268_v34  ;;  %v283_v42 = vunpack.c.h.bf16 %v268_v34  ;;  %v859_v34 = vld [vmem:[%s1278_s3 + $0x20] sm:$0xff] }
  0xb2   :  { %v257_v25 = vpop.f32.mrf.mxu3 }
  0xb3   :  { %v258_v30 = vadd.f32 %v257_v25, %v141_v62 }
  0xb4   :  { %v234_v26 = vpop.f32.mrf.mxu0 }
  0xb5   :  { %v235_v61 = vadd.f32 %v234_v26, %v96_v11 }
  0xba   :  { %v259_v31 = vpop.f32.mrf.mxu3 }
  0xbb   :  { %v260_v35 = vadd.f32 %v259_v31, %v146_v2  ;;  %v233_v2 = vadd.f32 %v232_v24, %v91_v54  ;;  %v270_v24 = vunpack.c.l.bf16 %v1209_v20 }
  0xbc   :  { %v237_v36 = vpop.f32.mrf.mxu0 }
  0xbd   :  { %v269_v37 = vpack.c.bf16 %v260_v35, %v258_v30  ;;  %v238_v59 = vadd.f32 %v237_v36, %v1203_v6  ;;  %v264_v7 = vpack.c.bf16 %v235_v61, %v233_v2  ;;  %v228_v6 = vadd.f32 %v1207_v14, %v1205_v12  ;;  %v856_v35 = vld [vmem:[%s1278_s3 + $0x8] sm:$0xff] }
  0xbe   :  { %v271_v12 = vunpack.c.h.bf16 %v1209_v20  ;;  %v855_v20 = vld [vmem:[%s1278_s3] sm:$0xff]  ;;  %v860_v36 = vld [vmem:[%s1278_s3 + $0x28] sm:$0xff] }
  0xbf   :  { %v284_v40 = vunpack.c.l.bf16 %v269_v37  ;;  %v285_v41 = vunpack.c.h.bf16 %v269_v37  ;;  %v263_v15 = vpack.c.bf16 %v230_v4, %v228_v6  ;;  %v274_v11 = vunpack.c.l.bf16 %v264_v7  ;;  %v857_v37 = vld [vmem:[%s1278_s3 + $0x10] sm:$0xff] }
  0xc0   :  { %v275_v16 = vunpack.c.h.bf16 %v264_v7 }
  0xc1   :  { %878 = vtanh.f32 %v284_v40  ;;  %v272_v17 = vunpack.c.l.bf16 %v263_v15  ;;  %v273_v19 = vunpack.c.h.bf16 %v263_v15  ;;  %v862_v40 = vld [vmem:[%s1278_s3 + $0x38] sm:$0xff] }
  0xc2   :  { %880 = vtanh.f32 %v285_v41  ;;  %v345_v41 = vpop.permute.xlu1 %344 }
  0xc3   :  { %882 = vtanh.f32 %v282_v39  ;;  %v858_v39 = vld [vmem:[%s1278_s3 + $0x18] sm:$0xff]  ;;  %s969_s3 = smov [#allocation3]  }
  0xc4   :  { %884 = vtanh.f32 %v283_v42  ;;  %v239_v46 = vpop.f32.mrf.mxu0  ;;  %v350_v42 = vpop.permute.xlu2 %349  ;;  %s764_s29 = sshll.u32 %s969_s3, 4  ;;  %s765_s29 = int_to_ptr.vmem [resolvable:$true] %s764_s29 }
  0xc5   :  { %886 = vtanh.f32 %v280_v44  ;;  %v240_v57 = vadd.f32 %v239_v46, %v106_v8 }
  0xc6   :  { %888 = vtanh.f32 %v281_v45 }
  0xc7   :  { %v879_v47 = vpop.eup %878  ;;  %v265_v62 = vpack.c.bf16 %v240_v57, %v238_v59 }
  0xc8   :  { %v881_v48 = vpop.eup %880 }
  0xc9   :  { %v883_v49 = vpop.eup %882  ;;  %v309_v50 = vpack.c.bf16 %v881_v48, %v879_v47  ;;  %v276_v9 = vunpack.c.l.bf16 %v265_v62  ;;  %v277_v8 = vunpack.c.h.bf16 %v265_v62 }
  0xca   :  { %v885_v51 = vpop.eup %884  ;;  %v360_v44 = vpop.permute.xlu1 %359 }
  0xcb   :  { %470 = vmatpush.bf16.msra.mxu1 %v309_v50  ;;  %865 = vmatpush.bf16.msra.mxu2 %v309_v50  ;;  %v887_v53 = vpop.eup %886  ;;  %v308_v55 = vpack.c.bf16 %v885_v51, %v883_v49 }
  0xcc   :  { %v242_v52 = vpop.f32.mrf.mxu0  ;;  %v889_v56 = vpop.eup %888 }
  0xcd   :  { %v307_v58 = vpack.c.bf16 %v889_v56, %v887_v53  ;;  %v243_v63 = vadd.f32 %v242_v52, %v1201_v5  ;;  %v365_v45 = vpop.permute.xlu2 %364 }
  0xcf   :  { %471 = vmatpush.bf16.msra.mxu1 %v308_v55  ;;  %866 = vmatpush.bf16.msra.mxu2 %v308_v55 }
  0xd2   :  { %v375_v48 = vpop.permute.xlu1 %374 }
  0xd3   :  { %472 = vmatpush.bf16.msra.mxu1 %v307_v58  ;;  %867 = vmatpush.bf16.msra.mxu2 %v307_v58 }
  0xd4   :  { %v244_v60 = vpop.f32.mrf.mxu0 }
  0xd5   :  { %v245_v0 = vadd.f32 %v244_v60, %v116_v43  ;;  %v355_v43 = vpop.permute.xlu0 %354  ;;  %v1241_v50 = vpop.permute.xlu2 %379 }
  0xd7   :  { %v266_v3 = vpack.c.bf16 %v245_v0, %v243_v63 }
  0xd9   :  { %v278_v10 = vunpack.c.l.bf16 %v266_v3  ;;  %v279_v13 = vunpack.c.h.bf16 %v266_v3 }
  0xda   :  { %v390_v54 = vpop.permute.xlu1 %389 }
  0xdb   :  { %890 = vtanh.f32 %v278_v10 }
  0xdc   :  { %892 = vtanh.f32 %v279_v13 }
  0xdd   :  { %894 = vtanh.f32 %v276_v9  ;;  %v370_v47 = vpop.permute.xlu0 %369  ;;  %v395_v56 = vpop.permute.xlu2 %394 }
  0xde   :  { %896 = vtanh.f32 %v277_v8 }
  0xdf   :  { %898 = vtanh.f32 %v274_v11 }
  0xe0   :  { %900 = vtanh.f32 %v275_v16 }
  0xe1   :  { %v891_v5 = vpop.eup %890  ;;  %902 = vtanh.f32 %v272_v17 }
  0xe2   :  { %v893_v18 = vpop.eup %892  ;;  %904 = vtanh.f32 %v273_v19  ;;  %v405_v60 = vpop.permute.xlu1 %404 }
  0xe3   :  { %v895_v21 = vpop.eup %894  ;;  %v306_v22 = vpack.c.bf16 %v893_v18, %v891_v5  ;;  %906 = vtanh.f32 %v270_v24 }
  0xe4   :  { %v897_v23 = vpop.eup %896  ;;  %908 = vtanh.f32 %v271_v12 }
  0xe5   :  { %473 = vmatpush.bf16.msra.mxu1 %v306_v22  ;;  %868 = vmatpush.bf16.msra.mxu2 %v306_v22  ;;  %v899_v14 = vpop.eup %898  ;;  %v305_v25 = vpack.c.bf16 %v897_v23, %v895_v21  ;;  %v385_v52 = vpop.permute.xlu0 %384 }
  0xe6   :  { %v901_v26 = vpop.eup %900  ;;  %v1243_v61 = vpop.permute.xlu2 %409 }
  0xe7   :  { %v903_v27 = vpop.eup %902  ;;  %v304_v28 = vpack.c.bf16 %v901_v26, %v899_v14 }
  0xe8   :  { %v905_v29 = vpop.eup %904 }
  0xe9   :  { %474 = vmatpush.bf16.msra.mxu1 %v305_v25  ;;  %869 = vmatpush.bf16.msra.mxu2 %v305_v25  ;;  %v907_v30 = vpop.eup %906  ;;  %v303_v31 = vpack.c.bf16 %v905_v29, %v903_v27 }
  0xea   :  { %v909_v32 = vpop.eup %908  ;;  %v1247_v10 = vpop.permute.xlu1 %419 }
  0xeb   :  { %v302_v33 = vpack.c.bf16 %v909_v32, %v907_v30 }
  0xed   :  { %475 = vmatpush.bf16.msra.mxu1 %v304_v28  ;;  %870 = vmatpush.bf16.msra.mxu2 %v304_v28  ;;  %v400_v58 = vpop.permute.xlu0 %399 }
  0xee   :  { %v1249_v15 = vpop.permute.xlu2 %617 }
  0xf1   :  { %476 = vmatpush.bf16.msra.mxu1 %v303_v31  ;;  %871 = vmatpush.bf16.msra.mxu2 %v303_v31 }
  0xf2   :  { %v628_v26 = vpop.permute.xlu1 %627 }
  0xf5   :  { %477 = vmatpush.bf16.msra.mxu1 %v302_v33  ;;  %872 = vmatpush.bf16.msra.mxu2 %v302_v33  ;;  %v1245_v4 = vpop.permute.xlu0 %414 }
  0xf6   :  { %v633_v30 = vpop.permute.xlu2 %632 }
  0xf8   :  { %478 = vmatmul.bf16.vlgmr.msra.gmra.mxu1 %v855_v20  ;;  %498 = vmatmul.bf16.vlgmr.msra.gmra.mxu2 %v859_v34 }
  0xfd   :  { %v623_v24 = vpop.permute.xlu0 %622 }
 0x108   :  { %483 = vmatmul.bf16.gmra.mxu1 %v856_v35  ;;  %503 = vmatmul.bf16.gmra.mxu2 %v860_v36 }
 0x118   :  { %488 = vmatmul.bf16.gmra.mxu1 %v857_v37  ;;  %508 = vmatmul.bf16.gmra.mxu2 %v861_v38 }
 0x128   :  { %493 = vmatmul.bf16.gmra.mxu1 %v858_v39  ;;  %513 = vmatmul.bf16.gmra.mxu2 %v862_v40 }
 0x175   :  { %v479_v46 = vpop.f32.mrf.mxu1 }
 0x176   :  { %v480_v63 = vadd.f32 %v479_v46, %v345_v41  ;;  %v638_v46 = vpop.permute.xlu0 %637 }
 0x178   :  { %v519_v9 = vpack.c.bf16 %v480_v63, %v480_v63 }
 0x17a   :  { %v535_v16 = vunpack.c.l.bf16 %v519_v9 }
 0x17b   :  { %v499_v49 = vpop.f32.mrf.mxu2 }
 0x17c   :  { %v500_v23 = vadd.f32 %v499_v49, %v385_v52 }
 0x17d   :  { %v481_v51 = vpop.f32.mrf.mxu1 }
 0x17e   :  { %v482_v62 = vadd.f32 %v481_v51, %v350_v42  ;;  %v527_v28 = vpack.c.bf16 %v500_v23, %v500_v23 }
 0x180   :  { %v520_v1 = vpack.c.bf16 %v482_v62, %v482_v62  ;;  %v543_v37 = vunpack.c.l.bf16 %v527_v28 }
 0x182   :  { %v536_v13 = vunpack.c.l.bf16 %v520_v1  ;;  %v648_v1 = vpop.permute.xlu2 %647 }
 0x183   :  { %v501_v53 = vpop.f32.mrf.mxu2 }
 0x184   :  { %910 = vtanh.f32 %v536_v13  ;;  %v502_v31 = vadd.f32 %v501_v53, %v390_v54 }
 0x185   :  { %v484_v55 = vpop.f32.mrf.mxu1  ;;  %912 = vtanh.f32 %v535_v16 }
 0x186   :  { %v485_v2 = vadd.f32 %v484_v55, %v355_v43  ;;  %v528_v40 = vpack.c.bf16 %v502_v31, %v502_v31 }
 0x188   :  { %v521_v8 = vpack.c.bf16 %v485_v2, %v485_v2 }
 0x18a   :  { %v537_v17 = vunpack.c.l.bf16 %v521_v8  ;;  %v911_v25 = vpop.eup %910 }
 0x18b   :  { %v504_v57 = vpop.f32.mrf.mxu2  ;;  %v913_v32 = vpop.eup %912  ;;  %v568_v33 = vpack.c.bf16 %v911_v25, %v911_v25 }
 0x18c   :  { %914 = vtanh.f32 %v537_v17  ;;  %v505_v35 = vadd.f32 %v504_v57, %v395_v56  ;;  %v567_v42 = vpack.c.bf16 %v913_v32, %v913_v32  ;;  %v643_v56 = vpop.permute.xlu1 %642 }
 0x18d   :  { %v486_v59 = vpop.f32.mrf.mxu1  ;;  %v584_v43 = vunpack.c.l.bf16 %v568_v33 }
 0x18e   :  { %v487_v7 = vadd.f32 %v486_v59, %v360_v44 }
 0x18f   :  { %v696_v59 = vmul.f32 %v623_v24, %v584_v43 }
 0x190   :  { %v522_v11 = vpack.c.bf16 %v487_v7, %v487_v7 }
 0x192   :  { %v538_v21 = vunpack.c.l.bf16 %v522_v11  ;;  %v915_v34 = vpop.eup %914 }
 0x193   :  { %v506_v0 = vpop.f32.mrf.mxu2  ;;  %v569_v44 = vpack.c.bf16 %v915_v34, %v915_v34 }
 0x194   :  { %916 = vtanh.f32 %v538_v21  ;;  %v507_v38 = vadd.f32 %v506_v0, %v400_v58  ;;  %v583_v58 = vunpack.c.l.bf16 %v567_v42  ;;  %v658_v32 = vpop.permute.xlu1 %657 }
 0x195   :  { %v489_v3 = vpop.f32.mrf.mxu1  ;;  %v585_v62 = vunpack.c.l.bf16 %v569_v44 }
 0x196   :  { %v490_v6 = vadd.f32 %v489_v3, %v365_v45  ;;  %v530_v53 = vpack.c.bf16 %v507_v38, %v507_v38  ;;  %v695_v16 = vmul.f32 %v1249_v15, %v583_v58  ;;  %v663_v38 = vpop.permute.xlu2 %662 }
 0x197   :  { %v697_v17 = vmul.f32 %v628_v26, %v585_v62 }
 0x198   :  { %v523_v18 = vpack.c.bf16 %v490_v6, %v490_v6  ;;  %v546_v13 = vunpack.c.l.bf16 %v530_v53  ;;  %v712_v15 = vsel %vm711_vm1, %v695_v16, 0.0 }
 0x199   :  { %v715_v26 = vsel %vm711_vm1, %v697_v17, 0.0 }
 0x19a   :  { %v539_v12 = vunpack.c.l.bf16 %v523_v18  ;;  %v917_v39 = vpop.eup %916 }
 0x19b   :  { %v509_v5 = vpop.f32.mrf.mxu2  ;;  %v570_v52 = vpack.c.bf16 %v917_v39, %v917_v39 }
 0x19c   :  { %918 = vtanh.f32 %v539_v12  ;;  %v510_v49 = vadd.f32 %v509_v5, %v405_v60  ;;  %v713_v5 = vsel %vm711_vm1, %v696_v59, 0.0 }
 0x19d   :  { %v491_v19 = vpop.f32.mrf.mxu1  ;;  %v586_v9 = vunpack.c.l.bf16 %v570_v52  ;;  %v714_v33 = vadd.f32 %v713_v5, %v712_v15 }
 0x19e   :  { %v492_v22 = vadd.f32 %v491_v19, %v370_v47  ;;  %v529_v47 = vpack.c.bf16 %v505_v35, %v505_v35  ;;  %v531_v3 = vpack.c.bf16 %v510_v49, %v510_v49 }
 0x19f   :  { %v716_v39 = vadd.f32 %v715_v26, %v714_v33 }
 0x1a0   :  { %v524_v14 = vpack.c.bf16 %v492_v22, %v492_v22  ;;  %v545_v2 = vunpack.c.l.bf16 %v529_v47  ;;  %v547_v21 = vunpack.c.l.bf16 %v531_v3  ;;  %v673_v3 = vpop.permute.xlu1 %672 }
 0x1a2   :  { %v540_v27 = vunpack.c.l.bf16 %v524_v14  ;;  %v919_v45 = vpop.eup %918  ;;  %v653_v14 = vpop.permute.xlu0 %652 }
 0x1a3   :  { %v511_v29 = vpop.f32.mrf.mxu2  ;;  %v571_v63 = vpack.c.bf16 %v919_v45, %v919_v45 }
 0x1a4   :  { %920 = vtanh.f32 %v540_v27  ;;  %v512_v57 = vadd.f32 %v511_v29, %v1243_v61 }
 0x1a5   :  { %v494_v20 = vpop.f32.mrf.mxu1  ;;  %922 = vtanh.f32 %v543_v37  ;;  %v587_v18 = vunpack.c.l.bf16 %v571_v63 }
 0x1a6   :  { %v495_v36 = vadd.f32 %v494_v20, %v375_v48  ;;  %v544_v48 = vunpack.c.l.bf16 %v528_v40  ;;  %v532_v6 = vpack.c.bf16 %v512_v57, %v512_v57 }
 0x1a7   :  { %v699_v28 = vmul.f32 %v638_v46, %v587_v18 }
 0x1a8   :  { %v525_v41 = vpack.c.bf16 %v495_v36, %v495_v36  ;;  %v548_v25 = vunpack.c.l.bf16 %v532_v6 }
 0x1a9   :  { %v719_v42 = vsel %vm711_vm1, %v699_v28, 0.0 }
 0x1aa   :  { %v541_v51 = vunpack.c.l.bf16 %v525_v41  ;;  %v921_v55 = vpop.eup %920  ;;  %v668_v58 = vpop.permute.xlu0 %667 }
 0x1ab   :  { %v514_v54 = vpop.f32.mrf.mxu2  ;;  %v572_v8 = vpack.c.bf16 %v921_v55, %v921_v55  ;;  %v923_v11 = vpop.eup %922 }
 0x1ac   :  { %924 = vtanh.f32 %v541_v51  ;;  %v515_v60 = vadd.f32 %v514_v54, %v1245_v4  ;;  %v575_v34 = vpack.c.bf16 %v923_v11, %v923_v11 }
 0x1ad   :  { %v496_v0 = vpop.f32.mrf.mxu1  ;;  %926 = vtanh.f32 %v544_v48  ;;  %v588_v23 = vunpack.c.l.bf16 %v572_v8 }
 0x1ae   :  { %v497_v7 = vadd.f32 %v496_v0, %v1241_v50  ;;  %928 = vtanh.f32 %v545_v2  ;;  %v533_v4 = vpack.c.bf16 %v515_v60, %v515_v60  ;;  %v698_v50 = vmul.f32 %v633_v30, %v586_v9 }
 0x1af   :  { %930 = vtanh.f32 %v546_v13  ;;  %v700_v36 = vmul.f32 %v643_v56, %v588_v23  ;;  %v591_v46 = vunpack.c.l.bf16 %v575_v34 }
 0x1b0   :  { %v526_v61 = vpack.c.bf16 %v497_v7, %v497_v7  ;;  %v549_v30 = vunpack.c.l.bf16 %v533_v4  ;;  %v717_v35 = vsel %vm711_vm1, %v698_v50, 0.0 }
 0x1b1   :  { %v718_v45 = vadd.f32 %v717_v35, %v716_v39  ;;  %v721_v49 = vsel %vm711_vm1, %v700_v36, 0.0  ;;  %v703_v62 = vmul.f32 %v658_v32, %v591_v46 }
 0x1b2   :  { %v925_v19 = vpop.eup %924  ;;  %v542_v22 = vunpack.c.l.bf16 %v526_v61  ;;  %v678_v61 = vpop.permute.xlu2 %677 }
 0x1b3   :  { %v573_v24 = vpack.c.bf16 %v925_v19, %v925_v19  ;;  %v516_v12 = vpop.f32.mrf.mxu2  ;;  %v927_v31 = vpop.eup %926  ;;  %v720_v53 = vadd.f32 %v719_v42, %v718_v45  ;;  %v727_v16 = vsel %vm711_vm1, %v703_v62, 0.0 }
 0x1b4   :  { %932 = vtanh.f32 %v542_v22  ;;  %v517_v27 = vadd.f32 %v516_v12, %v1247_v10  ;;  %v929_v37 = vpop.eup %928  ;;  %v576_v41 = vpack.c.bf16 %v927_v31, %v927_v31 }
 0x1b5   :  { %v589_v29 = vunpack.c.l.bf16 %v573_v24  ;;  %934 = vtanh.f32 %v547_v21  ;;  %v931_v40 = vpop.eup %930  ;;  %v577_v47 = vpack.c.bf16 %v929_v37, %v929_v37  ;;  %v722_v59 = vadd.f32 %v721_v49, %v720_v53 }
 0x1b6   :  { %v534_v20 = vpack.c.bf16 %v517_v27, %v517_v27  ;;  %936 = vtanh.f32 %v548_v25  ;;  %v592_v54 = vunpack.c.l.bf16 %v576_v41  ;;  %v578_v55 = vpack.c.bf16 %v931_v40, %v931_v40  ;;  %v683_v25 = vpop.permute.xlu0 %682 }
 0x1b7   :  { %v701_v43 = vmul.f32 %v648_v1, %v589_v29  ;;  %938 = vtanh.f32 %v549_v30  ;;  %v593_v63 = vunpack.c.l.bf16 %v577_v47  ;;  %v688_v29 = vpop.permute.xlu1 %687 }
 0x1b8   :  { %v550_v10 = vunpack.c.l.bf16 %v534_v20  ;;  %v704_v7 = vmul.f32 %v663_v38, %v592_v54  ;;  %v594_v9 = vunpack.c.l.bf16 %v578_v55 }
 0x1b9   :  { %v723_v56 = vsel %vm711_vm1, %v701_v43, 0.0  ;;  %v705_v5 = vmul.f32 %v668_v58, %v593_v63 }
 0x1ba   :  { %v933_v44 = vpop.eup %932  ;;  %940 = vtanh.f32 %v550_v10  ;;  %v724_v60 = vadd.f32 %v723_v56, %v722_v59  ;;  %v729_v21 = vsel %vm711_vm1, %v704_v7, 0.0  ;;  %v706_v4 = vmul.f32 %v673_v3, %v594_v9  ;;  %v693_v30 = vpop.permute.xlu2 %692 }
 0x1bb   :  { %v574_v51 = vpack.c.bf16 %v933_v44, %v933_v44  ;;  %v935_v52 = vpop.eup %934  ;;  %v731_v24 = vsel %vm711_vm1, %v705_v5, 0.0 }
 0x1bc   :  { %v937_v57 = vpop.eup %936  ;;  %v579_v0 = vpack.c.bf16 %v935_v52, %v935_v52  ;;  %v733_v15 = vsel %vm711_vm1, %v706_v4, 0.0 }
 0x1bd   :  { %v590_v48 = vunpack.c.l.bf16 %v574_v51  ;;  %v939_v2 = vpop.eup %938  ;;  %v580_v13 = vpack.c.bf16 %v937_v57, %v937_v57 }
 0x1be   :  { %v595_v17 = vunpack.c.l.bf16 %v579_v0  ;;  %v581_v18 = vpack.c.bf16 %v939_v2, %v939_v2  ;;  %v753_v44 = vpop.permute.xlu0 %752 }
 0x1bf   :  { %v702_v1 = vmul.f32 %v653_v14, %v590_v48  ;;  %v596_v22 = vunpack.c.l.bf16 %v580_v13  ;;  %v755_v46 = vperm.slane %v753_v44, 0 }
 0x1c0   :  { %v941_v6 = vpop.eup %940  ;;  %v707_v12 = vmul.f32 %v678_v61, %v595_v17  ;;  %v597_v14 = vunpack.c.l.bf16 %v581_v18 }
 0x1c1   :  { %v725_v8 = vsel %vm711_vm1, %v702_v1, 0.0  ;;  %v582_v50 = vpack.c.bf16 %v941_v6, %v941_v6  ;;  %v708_v26 = vmul.f32 %v683_v25, %v596_v22 }
 0x1c2   :  { %v726_v11 = vadd.f32 %v725_v8, %v724_v60  ;;  %v735_v32 = vsel %vm711_vm1, %v707_v12, 0.0  ;;  %v709_v33 = vmul.f32 %v688_v29, %v597_v14 }
 0x1c3   :  { %v598_v28 = vunpack.c.l.bf16 %v582_v50  ;;  %v737_v34 = vsel %vm711_vm1, %v708_v26, 0.0 }
 0x1c4   :  { %v728_v19 = vadd.f32 %v727_v16, %v726_v11  ;;  %v739_v37 = vsel %vm711_vm1, %v709_v33, 0.0 }
 0x1c5   :  { %v710_v35 = vmul.f32 %v693_v30, %v598_v28 }
 0x1c6   :  { %v730_v23 = vadd.f32 %v729_v21, %v728_v19 }
 0x1c7   :  { %v741_v39 = vsel %vm711_vm1, %v710_v35, 0.0 }
 0x1c8   :  { %v732_v27 = vadd.f32 %v731_v24, %v730_v23 }
 0x1ca   :  { %v734_v31 = vadd.f32 %v733_v15, %v732_v27 }
 0x1cc   :  { %v736_v20 = vadd.f32 %v735_v32, %v734_v31 }
 0x1ce   :  { %v738_v36 = vadd.f32 %v737_v34, %v736_v20 }
 0x1d0   :  { %v740_v38 = vadd.f32 %v739_v37, %v738_v36 }
 0x1d2   :  { %v742_v10 = vadd.f32 %v741_v39, %v740_v38 }
 0x1d4   :  { %v743_v40 = vrot.slane %v742_v10, 4 }
 0x1d6   :  { %v744_v41 = vadd.f32 %v743_v40, %v742_v10 }
 0x1d8   :  { %v745_v42 = vrot.slane %v744_v41, 2 }
 0x1da   :  { %v746_v43 = vadd.f32 %v745_v42, %v744_v41 }
 0x1dc   :  { %v747_v45 = vrot.slane %v746_v43, 1 }
 0x1de   :  { %v748_v47 = vadd.f32 %v747_v45, %v746_v43 }
 0x1e0   :  { %v756_v49 = vadd.f32 %v755_v46, %v748_v47 }
 0x1e2   :  { %758 = vst.msk [vmem:[#allocation3] sm:$0x1] %vm757_vm2, %v756_v49 }
 0x1e3   :  { %769 = dma.vmem_to_hbm [thread:$0]  %s765_s29, 16, %s767_s2, [#allocation4]  }
 0x1e4   :  { %966 = dma.done.wait [#allocation4], 16  }
 0x1e5   :  { %967 = vsyncadd [#allocation4], 4294967280 }
 0x1e6   :  { %774 = vsyncpa [#allocation4], 1 }

</bundles_post_ra>
